<compile_context>
chip_gen: v7x
topology: tpu7x:2x2x1
jax: 0.10.0
libtpu: 0.0.40
codegen_flags: <defaults>
</compile_context>

<pallas_src>
import functools

import jax
import jax.numpy as jnp
from jax.experimental import pallas as pl
from jax.experimental.pallas import tpu as pltpu


# --------------------------------------------------------------------------- #
# Kernel
# --------------------------------------------------------------------------- #
def _ce_online_kernel(logits_ref, labels_ref, out_ref, m_sc, l_sc, t_sc, *,
                      n_total, c_total, compute_dtype):
    """Cross-entropy with an online logsumexp over class blocks.

    Grid: (row_block i : parallel, class_block j : arbitrary/innermost).
    Scratch (persist across j): m_sc running max, l_sc running sum-exp,
    t_sc running target logit — all (TN, 1) f32.
    """
    i = pl.program_id(0)                 # row block
    j = pl.program_id(1)                 # class block (innermost)
    nj = pl.num_programs(1)

    @pl.when(j == 0)
    def _init():
        m_sc[...] = jnp.full_like(m_sc, -jnp.inf)
        l_sc[...] = jnp.zeros_like(l_sc)
        t_sc[...] = jnp.zeros_like(t_sc)

    logits = logits_ref[...].astype(compute_dtype)           # (TN, TC)
    labels = labels_ref[...]                                  # (TN, 1) int32
    tn, tc = logits.shape

    # (1, TC) class ids for this block; broadcasting against (TN, 1) labels gives
    # the (TN, TC) mask without materializing a (TN, TC) int32 iota.
    col_ids = j * tc + jax.lax.broadcasted_iota(jnp.int32, (1, tc), 1)

    # Mask padded class columns of the (possibly padded) last class block.
    if c_total % tc != 0:
        neg_inf = jnp.asarray(-jnp.inf, dtype=compute_dtype)
        logits = jnp.where(col_ids < c_total, logits, neg_inf)

    # Online logsumexp update (block max / rescale / accumulate), f32 accumulators.
    blk_max = jnp.max(logits, axis=-1, keepdims=True).astype(jnp.float32)   # (TN,1)
    m_old = m_sc[...]
    m_new = jnp.maximum(m_old, blk_max)
    alpha = jnp.exp(m_old - m_new)       # exp(-inf) = 0 on the first class block

    shifted = logits - m_new.astype(compute_dtype)            # (TN, TC) compute dtype
    l_sc[...] = alpha * l_sc[...] + jnp.sum(jnp.exp(shifted), axis=-1,
                                            keepdims=True, dtype=jnp.float32)

    # Target-logit gather for classes covered by this block.  SELECT semantics:
    # garbage in padded rows/columns is dropped, never multiplied.
    zero = jnp.zeros((), dtype=compute_dtype)
    t_sc[...] = t_sc[...] + jnp.sum(jnp.where(col_ids == labels, logits, zero),
                                    axis=-1, keepdims=True, dtype=jnp.float32)
    m_sc[...] = m_new

    @pl.when(j == nj - 1)
    def _finalize():
        per_example = (m_sc[...] + jnp.log(l_sc[...])) - t_sc[...]    # (TN, 1) f32
        # Mask padded rows of the (possibly padded) last row block (select, not mul).
        row_ids = jax.lax.broadcasted_iota(jnp.int32, (tn, 1), 0)
        valid = (i * tn + row_ids) < n_total
        per_example = jnp.where(valid, per_example, 0.0)
        # Lane-dense (1, 128) store: unmasked vst, one vreg per row block.
        out_ref[...] = jnp.broadcast_to(jnp.sum(per_example), (1, 128))


# --------------------------------------------------------------------------- #
# Generation-aware configuration
# --------------------------------------------------------------------------- #
def _device_kind():
    try:
        return jax.devices()[0].device_kind.lower()
    except Exception:
        return ""


def _vmem_limit_bytes():
    kind = _device_kind()
    if "v7" in kind:
        return 40 * 1024 * 1024            # 64 MiB physical on v7x: leave headroom
    if any(v in kind for v in ("v4", "v5", "v6")):
        return 100 * 1024 * 1024           # 128 MiB physical parts
    return 40 * 1024 * 1024                # conservative fallback


def _auto_compute_dtype(in_dtype):
    """bf16 compute on v6e/v7x (bf16 VPU+EUP) for bf16 inputs; f32 otherwise."""
    if jnp.dtype(in_dtype) == jnp.dtype(jnp.bfloat16):
        kind = _device_kind()
        if ("v6" in kind) or ("v7" in kind):
            return jnp.dtype(jnp.bfloat16)
    return jnp.dtype(jnp.float32)


def _round_up(x, m):
    return ((x + m - 1) // m) * m


def _select_tiles(n, c, in_itemsize, compute_itemsize, vmem_limit,
                  tile_rows=None, tile_cols=None):
    # Sublane packing of the streamed (native-dtype) logits tile.
    packing = max(8, 32 // max(1, in_itemsize))          # f32:8, bf16:16, int8/fp8:32
    n_pad = _round_up(max(n, 1), packing)

    # ---- class (lane) axis ----
    if tile_cols is not None:
        if tile_cols >= c:
            tc = c
        else:
            tc = min(_round_up(tile_cols, 128), _round_up(c, 128))
            if tc >= c:
                tc = c
    elif c <= 4096:
        tc = c                                           # single class block
    else:
        tc = 2048                                        # multiple of 128, masked tail

    # ---- row axis ----
    # Steady-state per-row VMEM bytes:
    #   2 x (TN, TC) native-dtype logits tile (double-buffered input)
    # + ~3 x (TN, TC) compute-dtype temporaries (upcast/shifted/exp, select mask)
    # + lane-padded (TN,1)->(TN,128) label buffers (x2) and f32 scratch rows (x3)
    per_row = 2 * tc * in_itemsize + 3 * tc * compute_itemsize + 5 * 128 * 4
    budget = vmem_limit // 2                             # headroom for outputs etc.

    if tile_rows is not None:
        tn = _round_up(max(int(tile_rows), 1), packing)
    else:
        tn = max(packing, (budget // per_row) // packing * packing)
        tn = min(tn, 4096)
        # Give the "parallel" row axis >= 2 blocks whenever there is enough work
        # so both v7x TensorCores (megacore) get a share.
        if n_pad >= 2 * packing:
            tn = min(tn, _round_up(pl.cdiv(n_pad, 2), packing))

    tn = max(packing, min(tn, n_pad))
    if n < packing:
        tn = n                                           # full-dim block for tiny N
    return tn, tc


def _make_logits_spec(tn, tc, in_itemsize, n_steps):
    index_map = lambda i, j: (i, j)
    small_tile = (tn * tc * in_itemsize < 512 * 1024) and (n_steps >= 4)
    if small_tile and hasattr(pl, "Buffered"):
        try:
            # Deeper buffering hides DMA issue latency in the overhead-bound regime.
            return pl.BlockSpec((tn, tc), index_map, pipeline_mode=pl.Buffered(3))
        except TypeError:
            pass
    return pl.BlockSpec((tn, tc), index_map)


# --------------------------------------------------------------------------- #
# Wrapper
# --------------------------------------------------------------------------- #
def semantic_loss_pallas(predictions, class_indices, *, tile_rows=None,
                         tile_cols=None, compute_dtype="auto"):
    """predictions: (N, C) logits (any float dtype); class_indices: (N,) int targets."""
    n, c = predictions.shape
    labels2d = class_indices.astype(jnp.int32).reshape(n, 1)

    in_itemsize = jnp.dtype(predictions.dtype).itemsize
    if compute_dtype == "auto":
        cdt = _auto_compute_dtype(predictions.dtype)
    else:
        cdt = jnp.dtype(compute_dtype)

    vmem_limit = _vmem_limit_bytes()
    tn, tc = _select_tiles(n, c, in_itemsize, jnp.dtype(cdt).itemsize, vmem_limit,
                           tile_rows, tile_cols)

    n_row_blocks = pl.cdiv(n, tn)
    n_col_blocks = pl.cdiv(c, tc)
    n_steps = n_row_blocks * n_col_blocks

    kernel = functools.partial(_ce_online_kernel, n_total=n, c_total=c,
                               compute_dtype=cdt)

    cost = pl.CostEstimate(
        flops=6 * n * c,
        transcendentals=n * c + 2 * n,
        bytes_accessed=n * c * in_itemsize + n * 4 + n_row_blocks * 128 * 4,
    )

    partials = pl.pallas_call(
        kernel,
        out_shape=jax.ShapeDtypeStruct((n_row_blocks, 128), jnp.float32),
        grid=(n_row_blocks, n_col_blocks),
        in_specs=[
            _make_logits_spec(tn, tc, in_itemsize, n_steps),   # logits, native dtype
            pl.BlockSpec((tn, 1), lambda i, j: (i, 0)),        # labels (revisited on j)
        ],
        out_specs=pl.BlockSpec((1, 128), lambda i, j: (i, 0)),
        scratch_shapes=[
            pltpu.VMEM((tn, 1), jnp.float32),   # running max m
            pltpu.VMEM((tn, 1), jnp.float32),   # running sum-exp l
            pltpu.VMEM((tn, 1), jnp.float32),   # running target logit
        ],
        compiler_params=pltpu.CompilerParams(
            dimension_semantics=("parallel", "arbitrary"),
            vmem_limit_bytes=vmem_limit,
        ),
        cost_estimate=cost,
    )(predictions, labels2d)

    # Final mean over the true N (cheap, plain JAX).  For extreme N consider a
    # pairwise reduction of the per-block partials here.
    return jnp.sum(partials[:, 0]) / jnp.float32(n)


# ---- glue that mirrors the PyTorch module's python-side gather ---- #
class _Obj:
    def __init__(self, label):
        self.label = label


class SemanticLossJAX:
    def __init__(self, known_classes):
        self.known_classes = known_classes

    def __call__(self, predictions, objects):
        class_indices = []
        for objects_sample in objects:
            for obj in objects_sample:
                idx = self.known_classes.get(obj.label)
                if idx is None:
                    raise KeyError(f"unknown class label: {obj.label!r}")
                class_indices.append(idx)
        class_indices = jnp.asarray(class_indices, dtype=jnp.int32)
        return semantic_loss_pallas(predictions, class_indices)


def _reference_ce(logits, idx):
    logp = jax.nn.log_softmax(logits.astype(jnp.float32), axis=-1)
    return -jnp.mean(logp[jnp.arange(logits.shape[0]), idx])


if __name__ == "__main__":
    key = jax.random.PRNGKey(0)
    k0, k1, k2, k3, k4, k5 = jax.random.split(key, 6)

    # --- Test 1: module-style call; 2 samples x 4 objects -> N=8, C=4 ---
    known_classes = {"car": 0, "tree": 1, "person": 2, "sign": 3}
    objects = [
        [_Obj("car"), _Obj("tree"), _Obj("person"), _Obj("sign")],
        [_Obj("sign"), _Obj("car"), _Obj("car"), _Obj("tree")],
    ]
    n_total = sum(len(s) for s in objects)
    predictions = jax.random.normal(k0, (n_total, len(known_classes)),
                                    dtype=jnp.float32)
    loss = SemanticLossJAX(known_classes)(predictions, objects)
    jax.block_until_ready(loss)
    idx = jnp.asarray([known_classes[o.label] for s in objects for o in s],
                      dtype=jnp.int32)
    ref = _reference_ce(predictions, idx)
    assert jnp.allclose(loss, ref, atol=1e-5, rtol=1e-5), (loss, ref)

    # --- Test 2: multi row-block grid with a padded last row tile ---
    n2, c2 = 200, 16
    logits2 = jax.random.normal(k1, (n2, c2), dtype=jnp.float32)
    idx2 = jax.random.randint(k2, (n2,), 0, c2, dtype=jnp.int32)
    loss2 = semantic_loss_pallas(logits2, idx2, tile_rows=64)   # 4 row blocks
    jax.block_until_ready(loss2)
    ref2 = _reference_ce(logits2, idx2)
    assert jnp.allclose(loss2, ref2, atol=1e-5, rtol=1e-5), (loss2, ref2)

    # --- Test 3: class-axis tiling (online logsumexp), padded last class block ---
    n3, c3 = 64, 300
    logits3 = jax.random.normal(k3, (n3, c3), dtype=jnp.float32)
    idx3 = jax.random.randint(k4, (n3,), 0, c3, dtype=jnp.int32)
    loss3 = semantic_loss_pallas(logits3, idx3, tile_cols=128)  # 3 class blocks
    jax.block_until_ready(loss3)
    ref3 = _reference_ce(logits3, idx3)
    assert jnp.allclose(loss3, ref3, atol=1e-5, rtol=1e-5), (loss3, ref3)

    # --- Test 4: bf16 input (bf16 compute path on v6e/v7x, f32 elsewhere) ---
    n4, c4 = 128, 32
    logits4 = jax.random.normal(k5, (n4, c4), dtype=jnp.float32).astype(jnp.bfloat16)
    idx4 = jax.random.randint(k2, (n4,), 0, c4, dtype=jnp.int32)
    loss4 = semantic_loss_pallas(logits4, idx4)
    jax.block_until_ready(loss4)
    ref4 = _reference_ce(logits4, idx4)
    assert jnp.allclose(loss4, ref4, atol=5e-2, rtol=2e-2), (loss4, ref4)

    print("KERNEL_OK")
</pallas_src>

<mosaic_0001>
module attributes {stable_mosaic.version = 11 : i64} {
  func.func @_ce_online_kernel(%arg0: i32, %arg1: i32, %arg2: memref<8x4xf32, #tpu.memory_space<vmem>>, %arg3: memref<8x1xi32, #tpu.memory_space<vmem>>, %arg4: memref<1x128xf32, #tpu.memory_space<vmem>>, %arg5: memref<8x1xf32, #tpu.memory_space<vmem>>, %arg6: memref<8x1xf32, #tpu.memory_space<vmem>>, %arg7: memref<8x1xf32, #tpu.memory_space<vmem>>) attributes {dimension_semantics = [#tpu.dimension_semantics<parallel>, #tpu.dimension_semantics<arbitrary>], iteration_bounds = array<i64: 1, 1>, scalar_prefetch = 0 : i64, scratch_operands = 3 : i64, tpu.core_type = #tpu.core_type<tc>, window_params = [{transform_indices = @transform_0, window_bounds = array<i64: 8, 4>}, {transform_indices = @transform_1, window_bounds = array<i64: 8, 1>}, {transform_indices = @transform_2, window_bounds = array<i64: 1, 128>}]} {
    %c0_i32 = arith.constant 0 : i32
    %0 = arith.cmpi eq, %arg1, %c0_i32 : i32
    %1 = arith.extui %0 : i1 to i32
    %c0_i32_0 = arith.constant 0 : i32
    %2 = arith.cmpi ne, %1, %c0_i32_0 : i32
    scf.if %2 {
      %cst_21 = arith.constant 0xFF800000 : f32
      %38 = vector.broadcast %cst_21 : f32 to vector<8x1xf32>
      %c0_22 = arith.constant 0 : index
      %c0_23 = arith.constant 0 : index
      %39 = vector.load %arg5[%c0_22, %c0_23] : memref<8x1xf32, #tpu.memory_space<vmem>>, vector<8x1xf32>
      tpu.vector_store %arg5[%c0_22, %c0_23], %38 {strides = array<i32>} : memref<8x1xf32, #tpu.memory_space<vmem>>, vector<8x1xf32>,
      %cst_24 = arith.constant 0.000000e+00 : f32
      %40 = vector.broadcast %cst_24 : f32 to vector<8x1xf32>
      %c0_25 = arith.constant 0 : index
      %c0_26 = arith.constant 0 : index
      %41 = vector.load %arg6[%c0_25, %c0_26] : memref<8x1xf32, #tpu.memory_space<vmem>>, vector<8x1xf32>
      tpu.vector_store %arg6[%c0_25, %c0_26], %40 {strides = array<i32>} : memref<8x1xf32, #tpu.memory_space<vmem>>, vector<8x1xf32>,
      %cst_27 = arith.constant 0.000000e+00 : f32
      %42 = vector.broadcast %cst_27 : f32 to vector<8x1xf32>
      %c0_28 = arith.constant 0 : index
      %c0_29 = arith.constant 0 : index
      %43 = vector.load %arg7[%c0_28, %c0_29] : memref<8x1xf32, #tpu.memory_space<vmem>>, vector<8x1xf32>
      tpu.vector_store %arg7[%c0_28, %c0_29], %42 {strides = array<i32>} : memref<8x1xf32, #tpu.memory_space<vmem>>, vector<8x1xf32>,
    } else {
    }
    %c0 = arith.constant 0 : index
    %c0_1 = arith.constant 0 : index
    %3 = vector.load %arg2[%c0, %c0_1] : memref<8x4xf32, #tpu.memory_space<vmem>>, vector<8x4xf32>
    %c0_2 = arith.constant 0 : index
    %c0_3 = arith.constant 0 : index
    %4 = vector.load %arg3[%c0_2, %c0_3] : memref<8x1xi32, #tpu.memory_space<vmem>>, vector<8x1xi32>
    %c4_i32 = arith.constant 4 : i32
    %5 = arith.muli %arg1, %c4_i32 : i32
    %6 = tpu.iota {dimensions = array<i32: 1>} : vector<1x4xi32>
    %7 = vector.broadcast %5 : i32 to vector<1x4xi32>
    %8 = arith.addi %7, %6 : vector<1x4xi32>
    %cst = arith.constant dense<0xFF800000> : vector<8xf32>
    %9 = vector.multi_reduction <maximumf>, %3, %cst [1] : vector<8x4xf32> to vector<8xf32>
    %10 = vector.shape_cast %9 : vector<8xf32> to vector<8x1xf32>
    %c0_4 = arith.constant 0 : index
    %c0_5 = arith.constant 0 : index
    %11 = vector.load %arg5[%c0_4, %c0_5] : memref<8x1xf32, #tpu.memory_space<vmem>>, vector<8x1xf32>
    %12 = arith.maximumf %11, %10 : vector<8x1xf32>
    %13 = arith.subf %11, %12 : vector<8x1xf32>
    %14 = math.exp %13 : vector<8x1xf32>
    %15 = vector.broadcast %12 : vector<8x1xf32> to vector<8x4xf32>
    %16 = arith.subf %3, %15 : vector<8x4xf32>
    %c0_6 = arith.constant 0 : index
    %c0_7 = arith.constant 0 : index
    %17 = vector.load %arg6[%c0_6, %c0_7] : memref<8x1xf32, #tpu.memory_space<vmem>>, vector<8x1xf32>
    %18 = arith.mulf %14, %17 : vector<8x1xf32>
    %19 = math.exp %16 : vector<8x4xf32>
    %cst_8 = arith.constant dense<0.000000e+00> : vector<8xf32>
    %20 = vector.multi_reduction <add>, %19, %cst_8 [1] : vector<8x4xf32> to vector<8xf32>
    %21 = vector.shape_cast %20 : vector<8xf32> to vector<8x1xf32>
    %22 = arith.addf %18, %21 : vector<8x1xf32>
    %c0_9 = arith.constant 0 : index
    %c0_10 = arith.constant 0 : index
    %23 = vector.load %arg6[%c0_9, %c0_10] : memref<8x1xf32, #tpu.memory_space<vmem>>, vector<8x1xf32>
    tpu.vector_store %arg6[%c0_9, %c0_10], %22 {strides = array<i32>} : memref<8x1xf32, #tpu.memory_space<vmem>>, vector<8x1xf32>,
    %c0_11 = arith.constant 0 : index
    %c0_12 = arith.constant 0 : index
    %24 = vector.load %arg7[%c0_11, %c0_12] : memref<8x1xf32, #tpu.memory_space<vmem>>, vector<8x1xf32>
    %25 = vector.broadcast %8 : vector<1x4xi32> to vector<8x4xi32>
    %26 = vector.broadcast %4 : vector<8x1xi32> to vector<8x4xi32>
    %27 = arith.cmpi eq, %25, %26 : vector<8x4xi32>
    %cst_13 = arith.constant 0.000000e+00 : f32
    %28 = vector.broadcast %cst_13 : f32 to vector<8x4xf32>
    %29 = arith.select %27, %3, %28 : vector<8x4xi1>, vector<8x4xf32>
    %cst_14 = arith.constant dense<0.000000e+00> : vector<8xf32>
    %30 = vector.multi_reduction <add>, %29, %cst_14 [1] : vector<8x4xf32> to vector<8xf32>
    %31 = vector.shape_cast %30 : vector<8xf32> to vector<8x1xf32>
    %32 = arith.addf %24, %31 : vector<8x1xf32>
    %c0_15 = arith.constant 0 : index
    %c0_16 = arith.constant 0 : index
    %33 = vector.load %arg7[%c0_15, %c0_16] : memref<8x1xf32, #tpu.memory_space<vmem>>, vector<8x1xf32>
    tpu.vector_store %arg7[%c0_15, %c0_16], %32 {strides = array<i32>} : memref<8x1xf32, #tpu.memory_space<vmem>>, vector<8x1xf32>,
    %c0_17 = arith.constant 0 : index
    %c0_18 = arith.constant 0 : index
    %34 = vector.load %arg5[%c0_17, %c0_18] : memref<8x1xf32, #tpu.memory_space<vmem>>, vector<8x1xf32>
    tpu.vector_store %arg5[%c0_17, %c0_18], %12 {strides = array<i32>} : memref<8x1xf32, #tpu.memory_space<vmem>>, vector<8x1xf32>,
    %c0_i32_19 = arith.constant 0 : i32
    %35 = arith.cmpi eq, %arg1, %c0_i32_19 : i32
    %36 = arith.extui %35 : i1 to i32
    %c0_i32_20 = arith.constant 0 : i32
    %37 = arith.cmpi ne, %36, %c0_i32_20 : i32
    scf.if %37 {
      %c0_21 = arith.constant 0 : index
      %c0_22 = arith.constant 0 : index
      %38 = vector.load %arg5[%c0_21, %c0_22] : memref<8x1xf32, #tpu.memory_space<vmem>>, vector<8x1xf32>
      %c0_23 = arith.constant 0 : index
      %c0_24 = arith.constant 0 : index
      %39 = vector.load %arg6[%c0_23, %c0_24] : memref<8x1xf32, #tpu.memory_space<vmem>>, vector<8x1xf32>
      %40 = math.log %39 : vector<8x1xf32>
      %41 = arith.addf %38, %40 : vector<8x1xf32>
      %c0_25 = arith.constant 0 : index
      %c0_26 = arith.constant 0 : index
      %42 = vector.load %arg7[%c0_25, %c0_26] : memref<8x1xf32, #tpu.memory_space<vmem>>, vector<8x1xf32>
      %43 = arith.subf %41, %42 : vector<8x1xf32>
      %44 = tpu.iota {dimensions = array<i32: 0>} : vector<8x1xi32>
      %c8_i32 = arith.constant 8 : i32
      %45 = arith.muli %arg0, %c8_i32 : i32
      %46 = vector.broadcast %45 : i32 to vector<8x1xi32>
      %47 = arith.addi %46, %44 : vector<8x1xi32>
      %c8_i32_27 = arith.constant 8 : i32
      %48 = vector.broadcast %c8_i32_27 : i32 to vector<8x1xi32>
      %49 = arith.cmpi slt, %47, %48 : vector<8x1xi32>
      %cst_28 = arith.constant 0.000000e+00 : f32
      %50 = vector.broadcast %cst_28 : f32 to vector<8x1xf32>
      %51 = arith.select %49, %43, %50 : vector<8x1xi1>, vector<8x1xf32>
      %52 = vector.shape_cast %51 : vector<8x1xf32> to vector<1x8x1xf32>
      %cst_29 = arith.constant dense<0.000000e+00> : vector<1xf32>
      %53 = vector.multi_reduction <add>, %52, %cst_29 [1, 2] : vector<1x8x1xf32> to vector<1xf32>
      %54 = vector.shape_cast %53 : vector<1xf32> to vector<1x1x1xf32>
      %55 = vector.extract %54[0, 0, 0] : f32 from vector<1x1x1xf32>
      %56 = vector.broadcast %55 : f32 to vector<1x128xf32>
      %c0_30 = arith.constant 0 : index
      %c0_31 = arith.constant 0 : index
      %57 = vector.load %arg4[%c0_30, %c0_31] : memref<1x128xf32, #tpu.memory_space<vmem>>, vector<1x128xf32>
      tpu.vector_store %arg4[%c0_30, %c0_31], %56 {strides = array<i32>} : memref<1x128xf32, #tpu.memory_space<vmem>>, vector<1x128xf32>,
    } else {
    }
    return
  }
  func.func @transform_0(%arg0: i32, %arg1: i32) -> (i32, i32) {
    %c0_i32 = arith.constant 0 : i32
    return %arg0, %arg1 : i32, i32
  }
  func.func @transform_1(%arg0: i32, %arg1: i32) -> (i32, i32) {
    %c0_i32 = arith.constant 0 : i32
    %c0_i32_0 = arith.constant 0 : i32
    return %arg0, %c0_i32 : i32, i32
  }
  func.func @transform_2(%arg0: i32, %arg1: i32) -> (i32, i32) {
    %c0_i32 = arith.constant 0 : i32
    %c0_i32_0 = arith.constant 0 : i32
    return %arg0, %c0_i32 : i32, i32
  }
}

</mosaic_0001>

<bundles_post_ra>
// kernel: tpu_custom_call.1
= control target key start
LH: loop header
LB: loop body
LE: loop exit
PB: predicated region body
PF: predicated region fallthrough
CT: control target
= control target key end

     0   :  { %vm27_vm0 = vcmask 31744   ;;  %s192_s0 = inlined_call_operand.vmem [shape: f32[8,4], index: 0, kind: input, shape index: {}]   ;;  %s193_s1 = inlined_call_operand.vmem [shape: s32[8,1], index: 1, kind: input, shape index: {}]   ;;  %s194_s2 = inlined_call_operand.hbm [shape: f32[1,128], index: 2, kind: output, shape index: {}]  }
   0x1   :  { %v20_v0 = vld [vmem:[%s192_s0] sm:$0xff] }
   0x2   :  { %7 = vsyncpa [#allocation6], 0  ;;  %v28_v1 = vsel %vm27_vm0, %v20_v0, -inf  ;;  %vm16_vm1 = vcmask 7168   ;;  %v145_v2 = vmov -inf   ;;  %v146_v3 = vmov 0  }
   0x3   :  { %29 = vmax.xlane.f32.xlu0 %v28_v1  ;;  %17 = vst.msk [vmem:[#allocation2] sm:$0xff] %vm16_vm1, %v145_v2  ;;  %114 = vset.pattern.permute.xlu1 %v146_v3  ;;  %v21_v4 = vld [vmem:[%s193_s1] sm:$0xff]  ;;  %v147_v5 = vmov 0.0   ;;  %v23_v13 = vlaneseq  ;;  %s148_s0 = smov [#allocation5]  }
   0x4   :  { %113 = vset.pattern.permute.xlu0 %v146_v3  ;;  %54 = vperm.xlu1 %114, %v21_v4   ;;  %18 = vst.msk [vmem:[#allocation3] sm:$0xff] %vm16_vm1, %v147_v5  ;;  %19 = vst.msk [vmem:[#allocation4] sm:$0xff] %vm16_vm1, %v147_v5  ;;  %s99_s1 = sshll.u32 %s148_s0, 4  ;;  %s100_s1 = int_to_ptr.vmem [resolvable:$true] %s99_s1 }
   0x5   :  { %v24_v14 = vand.u32 127, %v23_v13  ;;  %s121_s14 = scalar_lea.vmem %s100_s1, 16  ;;  %s125_s15 = scalar_lea.vmem %s100_s1, 32 }
   0x6   :  { %p122_p0 = scmp.ne.s32.totalorder %s100_s1, %s121_s14  ;;  %p126_p1 = scmp.lt.s32.totalorder %s100_s1, %s100_s1 }
   0x7   :  { %p127_p2 = scmp.lt.s32.totalorder %s125_s15, %s121_s14 }
   0x9   :  { %p128_p3 = por %p127_p2, %p126_p1 }
   0xa   :  { %v31_v6 = vld [vmem:[#allocation2] sm:$0xff] }
   0xb   :  { %v42_v22 = vld [vmem:[#allocation3] sm:$0xff]  ;;  %v52_v26 = vld [vmem:[#allocation4] sm:$0xff]  ;;  %p129_p4 = pnand %p128_p3, %p122_p0 }
  0x83   :  { %v55_v15 = vpop.permute.xlu1 %54 }
  0x84   :  { %vm56_vm2 = vcmp.eq.s32.totalorder %v24_v14, %v55_v15 }
  0x85   :  { %v57_v17 = vsel %vm56_vm2, %v20_v0, 0.0 }
  0x86   :  { %v58_v19 = vsel %vm27_vm0, %v57_v17, 0.0 }
  0x90   :  { %v30_v7 = vpop.xlane.xlu0 %29 }
  0x91   :  { %v32_v8 = vmax.f32 %v31_v6, %v30_v7 }
  0x93   :  { %v33_v9 = vsub.f32 %v31_v6, %v32_v8  ;;  %63 = vst.msk [vmem:[#allocation2] sm:$0xff] %vm16_vm1, %v32_v8  ;;  %38 = vperm.xlu0 %113, %v32_v8  }
  0x95   :  { %v34_v20 = vmul.f32 1.442695, %v33_v9 }
  0x9a   :  { %v67_v32 = vld [vmem:[#allocation2] sm:$0xff] }
 0x112   :  { %v39_v10 = vpop.permute.xlu0 %38 }
 0x113   :  { %v41_v11 = vsub.f32 %v20_v0, %v39_v10 }
 0x115   :  { %v44_v12 = vmul.f32 1.442695, %v41_v11 }
 0x117   :  { %115 = vpow2.f32 %v44_v12 }
 0x118   :  { %117 = vpow2.f32 %v34_v20 }
 0x121   :  { %v116_v16 = vpop.eup %115 }
 0x122   :  { %v46_v18 = vsel %vm27_vm0, %v116_v16, 0.0  ;;  %v118_v21 = vpop.eup %117 }
 0x123   :  { %47 = vadd.xlane.f32.xlu1 %v46_v18  ;;  %v43_v23 = vmul.f32 %v118_v21, %v42_v22 }
 0x127   :  { %59 = vadd.xlane.f32.xlu1 %v58_v19 }
 0x1b0   :  { %v48_v24 = vpop.xlane.xlu1 %47 }
 0x1b1   :  { %v49_v25 = vadd.f32 %v48_v24, %v43_v23 }
 0x1b3   :  { %51 = vst.msk [vmem:[#allocation3] sm:$0xff] %vm16_vm1, %v49_v25 }
 0x1b4   :  { %v60_v27 = vpop.xlane.xlu1 %59 }
 0x1b5   :  { %v61_v28 = vadd.f32 %v60_v27, %v52_v26 }
 0x1b7   :  { %62 = vst.msk [vmem:[#allocation4] sm:$0xff] %vm16_vm1, %v61_v28 }
 0x1ba   :  { %v68_v29 = vld [vmem:[#allocation3] sm:$0xff] }
 0x1bb   :  { %119 = vlog2.f32 %v68_v29 }
 0x1be   :  { %v72_v33 = vld [vmem:[#allocation4] sm:$0xff] }
 0x1c5   :  { %v120_v30 = vpop.eup %119 }
 0x1c6   :  { %v70_v31 = vmul.f32 0.6931472, %v120_v30 }
 0x1c8   :  { %v71_v34 = vadd.f32 %v70_v31, %v67_v32 }
 0x1ca   :  { %v73_v35 = vsub.f32 %v71_v34, %v72_v33 }
 0x1cc   :  { %v81_v36 = vsel %vm16_vm1, %v73_v35, 0.0 }
 0x1cd   :  { %82 = vadd.xlane.f32.xlu1 %v81_v36 }
 0x25a   :  { %v83_v37 = vpop.xlane.xlu1 %82 }
 0x25b   :  { %v84_v38 = vrot.slane %v83_v37, 4 }
 0x25d   :  { %v85_v39 = vadd.f32 %v84_v38, %v83_v37 }
 0x25f   :  { %v86_v40 = vrot.slane %v85_v39, 2 }
 0x261   :  { %v87_v41 = vadd.f32 %v86_v40, %v85_v39 }
 0x263   :  { %v88_v42 = vrot.slane %v87_v41, 1 }
 0x265   :  { %v89_v43 = vadd.f32 %v88_v42, %v87_v41 }
 0x267   :  { %107 = vpush %v89_v43 }
 0x298   :  { %s108_s13 = spop %107 }
 0x299   :  { %v91_v44 = vstv %s108_s13 }
 0x29a   :  { %92 = vst [vmem:[#allocation5] sm:$0x1] %v91_v44 }
 0x29b   :  { %132 = shalt.err (!%p129_p4)
}
 0x29c   :  { %s133_s18 = scalar_lea.hbm %s194_s2, 16 }
 0x29d   :  { %p134_p5 = scmp.ne.s32.totalorder %s194_s2, %s133_s18  ;;  %p137_p6 = scmp.lt.u32.totalorder %s133_s18, %s194_s2 }
 0x29f   :  { %p139_p7 = pnand %p137_p6, %p134_p5 }
 0x2a1   :  { %142 = shalt.err (!%p139_p7)
}
 0x2a2   :  { %102 = dma.vmem_to_hbm [thread:$0]  %s100_s1, 16, %s194_s2, [#allocation6]  }
 0x2a3   :  { %143 = dma.done.wait [#allocation6], 16  }
 0x2a4   :  { %144 = vsyncadd [#allocation6], 4294967280 }
 0x2a5   :  { %106 = vsyncpa [#allocation6], 1 }

</bundles_post_ra>
